<compile_context>
chip_gen: v6e
topology: v6e:2x2x1
jax: 0.10.0
libtpu: 0.0.40
codegen_flags: <defaults>
</compile_context>

<pallas_src>
import functools

import jax
import jax.numpy as jnp
from jax.experimental import pallas as pl
from jax.experimental.pallas import tpu as pltpu

EPS = 1e-5
NEG_BIG = -1e30                 # additive lane mask for padded channels (exp -> 0)
VMEM_LIMIT = 32 * 1024 * 1024   # explicit scoped-VMEM budget (safe on v5e/v6e/v7x)


def _round_up(x, m):
    return (x + m - 1) // m * m


# --------------------------------------------------------------------------- #
# Pass A: per-tile per-channel sum and sum-of-squares of s = v + xyz           #
# --------------------------------------------------------------------------- #
def _pos_stats_kernel(v_ref, xyz_ref, st_ref):
    s = v_ref[...].astype(jnp.float32) + xyz_ref[...].astype(jnp.float32)
    cp = s.shape[1]
    ssum = jnp.sum(s, axis=0, keepdims=True)
    ssq = jnp.sum(s * s, axis=0, keepdims=True)
    # rows: 0 = sum, 1 = sum of squares, 2..7 = padding (write full block once)
    st_ref[...] = jnp.concatenate([ssum, ssq, jnp.zeros((6, cp), jnp.float32)], axis=0)


# --------------------------------------------------------------------------- #
# Pass B: fused main pass                                                      #
#   value = s * pos_scale + pos_shift           (pos_norm folded to an affine) #
#   [energy | value2] = bf16(value) @ bf16([We | Wv])  (one fused MXU matmul)  #
#   energy *= mask ; softmax over lanes (padded lanes masked to -1e30)         #
#   t = bf16(value2*attention) @ bf16(Wt) + bt                                 #
#   emit t and per-tile sum/sumsq of t (rows past the true N are zeroed)       #
# --------------------------------------------------------------------------- #
def _main_kernel(add_pos, has_mask, n_rows, tile_n, *refs):
    it = iter(refs)
    v_ref = next(it)
    xyz_ref = next(it) if add_pos else None
    mask_ref = next(it) if has_mask else None
    wev_ref = next(it)
    wt_ref = next(it)
    pk_ref = next(it)      # [8, Cp]: 0 pos_scale, 1 pos_shift, 2 be, 3 bv, 4 bt, 5 lane_bias
    t_ref = next(it)
    st_ref = next(it)

    cp = v_ref.shape[1]
    v = v_ref[...].astype(jnp.float32)
    s = v + xyz_ref[...].astype(jnp.float32) if add_pos else v

    # pos_norm as a per-channel affine (scale/shift precomputed from pass-A stats)
    value = s * pk_ref[0:1, :] + pk_ref[1:2, :]

    # fused energy_conv + v_conv: single bf16 matmul, f32 accumulation on the MXU
    res = jnp.dot(value.astype(jnp.bfloat16), wev_ref[...],
                  preferred_element_type=jnp.float32)             # [tile_n, 2*Cp]
    energy = res[:, :cp] + pk_ref[2:3, :]
    value2 = res[:, cp:] + pk_ref[3:4, :]

    if has_mask:
        energy = energy * mask_ref[...].astype(jnp.float32)
    energy = energy + pk_ref[5:6, :]        # -1e30 on padded lanes -> zero attention

    m = jnp.max(energy, axis=-1, keepdims=True)
    e = jnp.exp(energy - m)
    attention = e * pl.reciprocal(jnp.sum(e, axis=-1, keepdims=True), approx=True)

    x_r = value2 * attention
    t = jnp.dot(x_r.astype(jnp.bfloat16), wt_ref[...],
                preferred_element_type=jnp.float32) + pk_ref[4:5, :]

    # zero rows beyond the true N so row padding does not pollute the BN stats
    row = jax.lax.broadcasted_iota(jnp.int32, (tile_n, 1), 0) + pl.program_id(0) * tile_n
    t = jnp.where(row < n_rows, t, 0.0)

    t_ref[...] = t
    tsum = jnp.sum(t, axis=0, keepdims=True)
    tsq = jnp.sum(t * t, axis=0, keepdims=True)
    st_ref[...] = jnp.concatenate([tsum, tsq, jnp.zeros((6, cp), jnp.float32)], axis=0)


# --------------------------------------------------------------------------- #
# Pass C: after_norm affine + ReLU + residual                                  #
# --------------------------------------------------------------------------- #
def _epilogue_kernel(t_ref, v_ref, pk_ref, out_ref):
    tn = t_ref[...] * pk_ref[0:1, :] + pk_ref[1:2, :]
    out_ref[...] = (jnp.maximum(tn, 0.0) + v_ref[...]).astype(out_ref.dtype)


# --------------------------------------------------------------------------- #
# One-time parameter preparation (done ONCE, outside the per-call wrapper):    #
# transpose Linear weights to [in, out], pad channels lane-dense to Cp>=128,   #
# fuse We/Wv into one [Cp, 2Cp] bf16 weight, pad the per-channel vectors.      #
# --------------------------------------------------------------------------- #
def prepare_params(params, channels):
    C = channels
    Cp = max(128, _round_up(C, 128))
    pad_w = lambda w: jnp.pad(jnp.asarray(w, jnp.float32).T, ((0, Cp - C), (0, Cp - C)))
    pad_v = lambda b: jnp.pad(jnp.asarray(b, jnp.float32).reshape(-1), (0, Cp - C))
    w_ev = jnp.concatenate([pad_w(params["We"]), pad_w(params["Wv"])], axis=1)
    lane_bias = jnp.where(jnp.arange(Cp) < C, 0.0, NEG_BIG).astype(jnp.float32)
    return {
        "w_ev": w_ev.astype(jnp.bfloat16),               # [Cp, 2Cp]
        "w_t": pad_w(params["Wt"]).astype(jnp.bfloat16),  # [Cp, Cp]
        "be": pad_v(params["be"]), "bv": pad_v(params["bv"]), "bt": pad_v(params["bt"]),
        "pos_gamma": pad_v(params["pos_gamma"]), "pos_beta": pad_v(params["pos_beta"]),
        "aft_gamma": pad_v(params["aft_gamma"]), "aft_beta": pad_v(params["aft_beta"]),
        "lane_bias": lane_bias,
    }


def attention_forward(v, xyz, prepared, mask=None, add_pos=True, *, block_n=None):
    """v, xyz: [N, C] float32. prepared: output of prepare_params. mask: [N, C] or None."""
    N, C = v.shape
    Cp = prepared["w_t"].shape[0]
    has_mask = mask is not None
    f32 = jnp.float32

    # Row-tile size: multiple of 8, sized so one [TN, Cp] f32 tile is ~512 KiB.
    if block_n is None:
        block_n = max(8, min(1024, (131072 // Cp) // 8 * 8))
    TN = min(block_n, _round_up(N, 8))
    Np = _round_up(N, TN)
    nt = Np // TN

    pad_nc = lambda x: jnp.pad(x.astype(f32), ((0, Np - N), (0, Cp - C)))
    v_p = pad_nc(v)
    xyz_p = pad_nc(xyz) if add_pos else None
    mask_p = pad_nc(mask) if has_mask else None

    row_spec = pl.BlockSpec((TN, Cp), lambda i: (i, 0))
    stat_spec = pl.BlockSpec((8, Cp), lambda i: (i, 0))
    full2 = lambda shape: pl.BlockSpec(shape, lambda i: (0, 0))
    cparams = pltpu.CompilerParams(dimension_semantics=("parallel",),
                                   vmem_limit_bytes=VMEM_LIMIT)

    # ---------------- Pass A: global per-channel stats of (v + xyz) ---------------
    if add_pos:
        st1 = pl.pallas_call(
            _pos_stats_kernel,
            out_shape=jax.ShapeDtypeStruct((nt * 8, Cp), f32),
            grid=(nt,),
            in_specs=[row_spec, row_spec],
            out_specs=stat_spec,
            compiler_params=cparams,
            cost_estimate=pl.CostEstimate(flops=3 * Np * Cp, transcendentals=0,
                                          bytes_accessed=(2 * Np + 8 * nt) * Cp * 4),
        )(v_p, xyz_p).reshape(nt, 8, Cp)
        s_sum = jnp.sum(st1[:, 0, :], axis=0)
        s_sq = jnp.sum(st1[:, 1, :], axis=0)
        mean = s_sum / N
        var = jnp.maximum(s_sq / N - mean * mean, 0.0)      # zero-padded rows are harmless
        pos_scale = prepared["pos_gamma"] * jax.lax.rsqrt(var + EPS)
        pos_shift = prepared["pos_beta"] - mean * pos_scale
    else:
        pos_scale = jnp.ones((Cp,), f32)
        pos_shift = jnp.zeros((Cp,), f32)

    zero_row = jnp.zeros((Cp,), f32)
    pack1 = jnp.stack([pos_scale, pos_shift, prepared["be"], prepared["bv"],
                       prepared["bt"], prepared["lane_bias"], zero_row, zero_row], axis=0)

    # ---------------- Pass B: fused main pass -------------------------------------
    main_inputs = ([v_p] + ([xyz_p] if add_pos else []) + ([mask_p] if has_mask else [])
                   + [prepared["w_ev"], prepared["w_t"], pack1])
    main_in_specs = ([row_spec] * (1 + int(add_pos) + int(has_mask))
                     + [full2((Cp, 2 * Cp)), full2((Cp, Cp)), full2((8, Cp))])
    mm_flops = 2 * Np * Cp * (2 * Cp) + 2 * Np * Cp * Cp
    main_bytes = ((2 + int(add_pos) + int(has_mask)) * Np * Cp * 4
                  + 3 * Cp * Cp * 2 + (8 + nt * 8) * Cp * 4)

    t_buf, st2 = pl.pallas_call(
        functools.partial(_main_kernel, add_pos, has_mask, N, TN),
        out_shape=(jax.ShapeDtypeStruct((Np, Cp), f32),
                   jax.ShapeDtypeStruct((nt * 8, Cp), f32)),
        grid=(nt,),
        in_specs=main_in_specs,
        out_specs=(row_spec, stat_spec),
        compiler_params=cparams,
        cost_estimate=pl.CostEstimate(flops=mm_flops + 12 * Np * Cp,
                                      transcendentals=Np * Cp,
                                      bytes_accessed=main_bytes),
    )(*main_inputs)

    st2 = st2.reshape(nt, 8, Cp)
    t_sum = jnp.sum(st2[:, 0, :], axis=0)
    t_sq = jnp.sum(st2[:, 1, :], axis=0)
    mean2 = t_sum / N
    var2 = jnp.maximum(t_sq / N - mean2 * mean2, 0.0)
    aft_scale = prepared["aft_gamma"] * jax.lax.rsqrt(var2 + EPS)
    aft_shift = prepared["aft_beta"] - mean2 * aft_scale
    pack2 = jnp.stack([aft_scale, aft_shift] + [zero_row] * 6, axis=0)

    # ---------------- Pass C: after_norm + ReLU + residual (aliases v buffer) -----
    out_p = pl.pallas_call(
        _epilogue_kernel,
        out_shape=jax.ShapeDtypeStruct((Np, Cp), f32),
        grid=(nt,),
        in_specs=[row_spec, row_spec, full2((8, Cp))],
        out_specs=row_spec,
        input_output_aliases={1: 0},     # reuse the padded-v HBM buffer for the output
        compiler_params=cparams,
        cost_estimate=pl.CostEstimate(flops=4 * Np * Cp, transcendentals=0,
                                      bytes_accessed=3 * Np * Cp * 4),
    )(t_buf, v_p, pack2)

    return out_p[:N, :C].astype(v.dtype)


# --------------------------------------------------------------------------- #
# Pure-JAX reference mirroring the PyTorch forward (training-mode BN stats).   #
# `matmul_dtype=jnp.bfloat16` evaluates the Linear layers at the same          #
# bf16-operand / f32-accumulate precision the kernel uses on the MXU.          #
# --------------------------------------------------------------------------- #
def _reference(v, xyz, params, mask, add_pos=True, matmul_dtype=jnp.float32):
    def bn(x, g, b):
        mu = jnp.mean(x, axis=0, keepdims=True)
        var = jnp.mean((x - mu) ** 2, axis=0, keepdims=True)
        return (x - mu) / jnp.sqrt(var + EPS) * g + b

    def lin(x, w, b):
        return jnp.dot(x.astype(matmul_dtype), w.T.astype(matmul_dtype),
                       preferred_element_type=jnp.float32) + b

    value = bn(v + xyz, params["pos_gamma"], params["pos_beta"]) if add_pos else v
    energy = lin(value, params["We"], params["be"])
    value2 = lin(value, params["Wv"], params["bv"])
    if mask is not None:
        energy = energy * mask
    attention = jax.nn.softmax(energy, axis=-1)
    x_r = value2 * attention
    t = lin(x_r, params["Wt"], params["bt"])
    return jax.nn.relu(bn(t, params["aft_gamma"], params["aft_beta"])) + v


def init_params(key, channels):
    ks = jax.random.split(key, 6)
    scale = 1.0 / jnp.sqrt(channels)
    return {
        "We": jax.random.uniform(ks[0], (channels, channels), jnp.float32, -scale, scale),
        "be": jax.random.uniform(ks[1], (channels,), jnp.float32, -scale, scale),
        "Wv": jax.random.uniform(ks[2], (channels, channels), jnp.float32, -scale, scale),
        "bv": jax.random.uniform(ks[3], (channels,), jnp.float32, -scale, scale),
        "Wt": jax.random.uniform(ks[4], (channels, channels), jnp.float32, -scale, scale),
        "bt": jax.random.uniform(ks[5], (channels,), jnp.float32, -scale, scale),
        "pos_gamma": jnp.ones((channels,), jnp.float32),
        "pos_beta": jnp.zeros((channels,), jnp.float32),
        "aft_gamma": jnp.ones((channels,), jnp.float32),
        "aft_beta": jnp.zeros((channels,), jnp.float32),
    }


if __name__ == "__main__":
    # TODO(synk): eval-mode (running-stats) BatchNorm path is not implemented;
    # only training-mode batch statistics (matching the original reference).
    N, C = 200, 32  # N points (not a multiple of the tile), C channels
    key = jax.random.PRNGKey(0)
    kv, kx, km, kp = jax.random.split(key, 4)

    v = jax.random.normal(kv, (N, C), jnp.float32)
    xyz = jax.random.normal(kx, (N, C), jnp.float32)   # positional features, same shape as v
    mask = (jax.random.uniform(km, (N, C)) > 0.2).astype(jnp.float32)
    params = init_params(kp, C)
    prepared = prepare_params(params, C)              # one-time weight prep (transpose/pad/fuse)

    # Config 1: add_pos + mask, multi-tile grid (block_n=64 -> 4 row tiles).
    fwd = jax.jit(functools.partial(attention_forward, add_pos=True, block_n=64))
    out = jax.block_until_ready(fwd(v, xyz, prepared, mask))
    ref = _reference(v, xyz, params, mask, add_pos=True, matmul_dtype=jnp.bfloat16)
    assert out.shape == (N, C)
    # Tolerance accounts for the approx-EUP softmax reciprocal and BatchNorm's
    # variance normalization amplifying tiny (matched-precision) matmul deltas.
    assert jnp.allclose(out, ref, atol=2e-2, rtol=2e-2), float(jnp.max(jnp.abs(out - ref)))

    # Config 2: no positional norm, no mask (exercises the specialized paths).
    fwd2 = jax.jit(functools.partial(attention_forward, add_pos=False))
    out2 = jax.block_until_ready(fwd2(v, xyz, prepared))
    ref2 = _reference(v, xyz, params, None, add_pos=False, matmul_dtype=jnp.bfloat16)
    assert jnp.allclose(out2, ref2, atol=2e-2, rtol=2e-2), float(jnp.max(jnp.abs(out2 - ref2)))

    print("KERNEL_OK")
</pallas_src>

<mosaic_0001>
module attributes {stable_mosaic.version = 11 : i64} {
  func.func @_pos_stats_kernel(%arg0: i32, %arg1: memref<64x128xf32, #tpu.memory_space<vmem>>, %arg2: memref<64x128xf32, #tpu.memory_space<vmem>>, %arg3: memref<8x128xf32, #tpu.memory_space<vmem>>) attributes {dimension_semantics = [#tpu.dimension_semantics<parallel>], iteration_bounds = array<i64: 4>, scalar_prefetch = 0 : i64, scratch_operands = 0 : i64, tpu.core_type = #tpu.core_type<tc>, window_params = [{transform_indices = @transform_0, window_bounds = array<i64: 64, 128>}, {transform_indices = @transform_1, window_bounds = array<i64: 64, 128>}, {transform_indices = @transform_2, window_bounds = array<i64: 8, 128>}]} {
    %c0 = arith.constant 0 : index
    %c0_0 = arith.constant 0 : index
    %0 = vector.load %arg1[%c0, %c0_0] : memref<64x128xf32, #tpu.memory_space<vmem>>, vector<64x128xf32>
    %c0_1 = arith.constant 0 : index
    %c0_2 = arith.constant 0 : index
    %1 = vector.load %arg2[%c0_1, %c0_2] : memref<64x128xf32, #tpu.memory_space<vmem>>, vector<64x128xf32>
    %2 = arith.addf %0, %1 : vector<64x128xf32>
    %cst = arith.constant dense<0.000000e+00> : vector<128xf32>
    %3 = vector.multi_reduction <add>, %2, %cst [0] : vector<64x128xf32> to vector<128xf32>
    %4 = vector.shape_cast %3 : vector<128xf32> to vector<1x128xf32>
    %5 = arith.mulf %2, %2 : vector<64x128xf32>
    %cst_3 = arith.constant dense<0.000000e+00> : vector<128xf32>
    %6 = vector.multi_reduction <add>, %5, %cst_3 [0] : vector<64x128xf32> to vector<128xf32>
    %7 = vector.shape_cast %6 : vector<128xf32> to vector<1x128xf32>
    %cst_4 = arith.constant 0.000000e+00 : f32
    %8 = vector.broadcast %cst_4 : f32 to vector<6x128xf32>
    %9 = tpu.concatenate %4, %7, %8 in 0 : vector<1x128xf32>, vector<1x128xf32>, vector<6x128xf32> -> vector<8x128xf32>
    %c0_5 = arith.constant 0 : index
    %c0_6 = arith.constant 0 : index
    %10 = vector.load %arg3[%c0_5, %c0_6] : memref<8x128xf32, #tpu.memory_space<vmem>>, vector<8x128xf32>
    tpu.vector_store %arg3[%c0_5, %c0_6], %9 {strides = array<i32>} : memref<8x128xf32, #tpu.memory_space<vmem>>, vector<8x128xf32>,
    return
  }
  func.func @transform_0(%arg0: i32) -> (i32, i32) {
    %c0_i32 = arith.constant 0 : i32
    %c0_i32_0 = arith.constant 0 : i32
    return %arg0, %c0_i32 : i32, i32
  }
  func.func @transform_1(%arg0: i32) -> (i32, i32) {
    %c0_i32 = arith.constant 0 : i32
    %c0_i32_0 = arith.constant 0 : i32
    return %arg0, %c0_i32 : i32, i32
  }
  func.func @transform_2(%arg0: i32) -> (i32, i32) {
    %c0_i32 = arith.constant 0 : i32
    %c0_i32_0 = arith.constant 0 : i32
    return %arg0, %c0_i32 : i32, i32
  }
}

module attributes {stable_mosaic.version = 11 : i64} {
  func.func @_main_kernel(%arg0: i32, %arg1: memref<64x128xf32, #tpu.memory_space<vmem>>, %arg2: memref<64x128xf32, #tpu.memory_space<vmem>>, %arg3: memref<64x128xf32, #tpu.memory_space<vmem>>, %arg4: memref<128x256xbf16, #tpu.memory_space<vmem>>, %arg5: memref<128x128xbf16, #tpu.memory_space<vmem>>, %arg6: memref<8x128xf32, #tpu.memory_space<vmem>>, %arg7: memref<64x128xf32, #tpu.memory_space<vmem>>, %arg8: memref<8x128xf32, #tpu.memory_space<vmem>>) attributes {dimension_semantics = [#tpu.dimension_semantics<parallel>], iteration_bounds = array<i64: 4>, scalar_prefetch = 0 : i64, scratch_operands = 0 : i64, tpu.core_type = #tpu.core_type<tc>, window_params = [{transform_indices = @transform_0, window_bounds = array<i64: 64, 128>}, {transform_indices = @transform_1, window_bounds = array<i64: 64, 128>}, {transform_indices = @transform_2, window_bounds = array<i64: 64, 128>}, {pipeline_mode = #tpu.pipeline_mode<synchronous>, transform_indices = @transform_3, window_bounds = array<i64: 128, 256>}, {pipeline_mode = #tpu.pipeline_mode<synchronous>, transform_indices = @transform_4, window_bounds = array<i64: 128, 128>}, {pipeline_mode = #tpu.pipeline_mode<synchronous>, transform_indices = @transform_5, window_bounds = array<i64: 8, 128>}, {transform_indices = @transform_6, window_bounds = array<i64: 64, 128>}, {transform_indices = @transform_7, window_bounds = array<i64: 8, 128>}]} {
    %c0 = arith.constant 0 : index
    %c0_0 = arith.constant 0 : index
    %0 = vector.load %arg1[%c0, %c0_0] : memref<64x128xf32, #tpu.memory_space<vmem>>, vector<64x128xf32>
    %c0_1 = arith.constant 0 : index
    %c0_2 = arith.constant 0 : index
    %1 = vector.load %arg2[%c0_1, %c0_2] : memref<64x128xf32, #tpu.memory_space<vmem>>, vector<64x128xf32>
    %2 = arith.addf %0, %1 : vector<64x128xf32>
    %c0_3 = arith.constant 0 : index
    %c0_4 = arith.constant 0 : index
    %3 = vector.load %arg6[%c0_3, %c0_4] : memref<8x128xf32, #tpu.memory_space<vmem>>, vector<1x128xf32>
    %4 = vector.broadcast %3 : vector<1x128xf32> to vector<64x128xf32>
    %5 = arith.mulf %2, %4 : vector<64x128xf32>
    %c1 = arith.constant 1 : index
    %c0_5 = arith.constant 0 : index
    %6 = vector.load %arg6[%c1, %c0_5] : memref<8x128xf32, #tpu.memory_space<vmem>>, vector<1x128xf32>
    %7 = vector.broadcast %6 : vector<1x128xf32> to vector<64x128xf32>
    %8 = arith.addf %5, %7 : vector<64x128xf32>
    %9 = arith.truncf %8 : vector<64x128xf32> to vector<64x128xbf16>
    %c0_6 = arith.constant 0 : index
    %c0_7 = arith.constant 0 : index
    %10 = vector.load %arg4[%c0_6, %c0_7] : memref<128x256xbf16, #tpu.memory_space<vmem>>, vector<128x256xbf16>
    %cst = arith.constant dense<0.000000e+00> : vector<64x256xf32>
    %11 = tpu.matmul %9, %10, %cst {dimension_numbers = #tpu.dot_dimension_numbers<[1], [0], [0], [1], [0, 0, 1, 1], [], []>} : vector<64x128xbf16>, vector<128x256xbf16>, vector<64x256xf32> -> vector<64x256xf32>
    %12 = vector.extract_strided_slice %11 {offsets = [0, 0], sizes = [64, 128], strides = [1, 1]} : vector<64x256xf32> to vector<64x128xf32>
    %c2 = arith.constant 2 : index
    %c0_8 = arith.constant 0 : index
    %13 = vector.load %arg6[%c2, %c0_8] : memref<8x128xf32, #tpu.memory_space<vmem>>, vector<1x128xf32>
    %14 = vector.broadcast %13 : vector<1x128xf32> to vector<64x128xf32>
    %15 = arith.addf %12, %14 : vector<64x128xf32>
    %16 = vector.extract_strided_slice %11 {offsets = [0, 128], sizes = [64, 128], strides = [1, 1]} : vector<64x256xf32> to vector<64x128xf32>
    %c3 = arith.constant 3 : index
    %c0_9 = arith.constant 0 : index
    %17 = vector.load %arg6[%c3, %c0_9] : memref<8x128xf32, #tpu.memory_space<vmem>>, vector<1x128xf32>
    %18 = vector.broadcast %17 : vector<1x128xf32> to vector<64x128xf32>
    %19 = arith.addf %16, %18 : vector<64x128xf32>
    %c0_10 = arith.constant 0 : index
    %c0_11 = arith.constant 0 : index
    %20 = vector.load %arg3[%c0_10, %c0_11] : memref<64x128xf32, #tpu.memory_space<vmem>>, vector<64x128xf32>
    %21 = arith.mulf %15, %20 : vector<64x128xf32>
    %c5 = arith.constant 5 : index
    %c0_12 = arith.constant 0 : index
    %22 = vector.load %arg6[%c5, %c0_12] : memref<8x128xf32, #tpu.memory_space<vmem>>, vector<1x128xf32>
    %23 = vector.broadcast %22 : vector<1x128xf32> to vector<64x128xf32>
    %24 = arith.addf %21, %23 : vector<64x128xf32>
    %cst_13 = arith.constant dense<0xFF800000> : vector<64xf32>
    %25 = vector.multi_reduction <maximumf>, %24, %cst_13 [1] : vector<64x128xf32> to vector<64xf32>
    %26 = vector.shape_cast %25 : vector<64xf32> to vector<64x1xf32>
    %27 = vector.broadcast %26 : vector<64x1xf32> to vector<64x128xf32>
    %28 = arith.subf %24, %27 : vector<64x128xf32>
    %29 = math.exp %28 : vector<64x128xf32>
    %cst_14 = arith.constant dense<0.000000e+00> : vector<64xf32>
    %30 = vector.multi_reduction <add>, %29, %cst_14 [1] : vector<64x128xf32> to vector<64xf32>
    %31 = vector.shape_cast %30 : vector<64xf32> to vector<64x1xf32>
    %32 = tpu.reciprocal %31 {approx = true} : vector<64x1xf32> -> vector<64x1xf32>
    %33 = vector.broadcast %32 : vector<64x1xf32> to vector<64x128xf32>
    %34 = arith.mulf %29, %33 : vector<64x128xf32>
    %35 = arith.mulf %19, %34 : vector<64x128xf32>
    %36 = arith.truncf %35 : vector<64x128xf32> to vector<64x128xbf16>
    %c0_15 = arith.constant 0 : index
    %c0_16 = arith.constant 0 : index
    %37 = vector.load %arg5[%c0_15, %c0_16] : memref<128x128xbf16, #tpu.memory_space<vmem>>, vector<128x128xbf16>
    %cst_17 = arith.constant dense<0.000000e+00> : vector<64x128xf32>
    %38 = tpu.matmul %36, %37, %cst_17 {dimension_numbers = #tpu.dot_dimension_numbers<[1], [0], [0], [1], [0, 0, 1, 1], [], []>} : vector<64x128xbf16>, vector<128x128xbf16>, vector<64x128xf32> -> vector<64x128xf32>
    %c4 = arith.constant 4 : index
    %c0_18 = arith.constant 0 : index
    %39 = vector.load %arg6[%c4, %c0_18] : memref<8x128xf32, #tpu.memory_space<vmem>>, vector<1x128xf32>
    %40 = vector.broadcast %39 : vector<1x128xf32> to vector<64x128xf32>
    %41 = arith.addf %38, %40 : vector<64x128xf32>
    %42 = tpu.iota {dimensions = array<i32: 0>} : vector<64x1xi32>
    %c64_i32 = arith.constant 64 : i32
    %43 = arith.muli %arg0, %c64_i32 : i32
    %44 = vector.broadcast %43 : i32 to vector<64x1xi32>
    %45 = arith.addi %42, %44 : vector<64x1xi32>
    %c200_i32 = arith.constant 200 : i32
    %46 = vector.broadcast %c200_i32 : i32 to vector<64x1xi32>
    %47 = arith.cmpi slt, %45, %46 : vector<64x1xi32>
    %cst_19 = arith.constant 0.000000e+00 : f32
    %48 = vector.shape_cast %47 : vector<64x1xi1> to vector<64x1xi1>
    %49 = vector.broadcast %48 : vector<64x1xi1> to vector<64x128xi1>
    %50 = vector.broadcast %cst_19 : f32 to vector<64x128xf32>
    %51 = arith.select %49, %41, %50 : vector<64x128xi1>, vector<64x128xf32>
    %c0_20 = arith.constant 0 : index
    %c0_21 = arith.constant 0 : index
    %52 = vector.load %arg7[%c0_20, %c0_21] : memref<64x128xf32, #tpu.memory_space<vmem>>, vector<64x128xf32>
    tpu.vector_store %arg7[%c0_20, %c0_21], %51 {strides = array<i32>} : memref<64x128xf32, #tpu.memory_space<vmem>>, vector<64x128xf32>,
    %cst_22 = arith.constant dense<0.000000e+00> : vector<128xf32>
    %53 = vector.multi_reduction <add>, %51, %cst_22 [0] : vector<64x128xf32> to vector<128xf32>
    %54 = vector.shape_cast %53 : vector<128xf32> to vector<1x128xf32>
    %55 = arith.mulf %51, %51 : vector<64x128xf32>
    %cst_23 = arith.constant dense<0.000000e+00> : vector<128xf32>
    %56 = vector.multi_reduction <add>, %55, %cst_23 [0] : vector<64x128xf32> to vector<128xf32>
    %57 = vector.shape_cast %56 : vector<128xf32> to vector<1x128xf32>
    %cst_24 = arith.constant 0.000000e+00 : f32
    %58 = vector.broadcast %cst_24 : f32 to vector<6x128xf32>
    %59 = tpu.concatenate %54, %57, %58 in 0 : vector<1x128xf32>, vector<1x128xf32>, vector<6x128xf32> -> vector<8x128xf32>
    %c0_25 = arith.constant 0 : index
    %c0_26 = arith.constant 0 : index
    %60 = vector.load %arg8[%c0_25, %c0_26] : memref<8x128xf32, #tpu.memory_space<vmem>>, vector<8x128xf32>
    tpu.vector_store %arg8[%c0_25, %c0_26], %59 {strides = array<i32>} : memref<8x128xf32, #tpu.memory_space<vmem>>, vector<8x128xf32>,
    return
  }
  func.func @transform_0(%arg0: i32) -> (i32, i32) {
    %c0_i32 = arith.constant 0 : i32
    %c0_i32_0 = arith.constant 0 : i32
    return %arg0, %c0_i32 : i32, i32
  }
  func.func @transform_1(%arg0: i32) -> (i32, i32) {
    %c0_i32 = arith.constant 0 : i32
    %c0_i32_0 = arith.constant 0 : i32
    return %arg0, %c0_i32 : i32, i32
  }
  func.func @transform_2(%arg0: i32) -> (i32, i32) {
    %c0_i32 = arith.constant 0 : i32
    %c0_i32_0 = arith.constant 0 : i32
    return %arg0, %c0_i32 : i32, i32
  }
  func.func @transform_3(%arg0: i32) -> (i32, i32) {
    %c0_i32 = arith.constant 0 : i32
    %c0_i32_0 = arith.constant 0 : i32
    %c0_i32_1 = arith.constant 0 : i32
    return %c0_i32, %c0_i32_0 : i32, i32
  }
  func.func @transform_4(%arg0: i32) -> (i32, i32) {
    %c0_i32 = arith.constant 0 : i32
    %c0_i32_0 = arith.constant 0 : i32
    %c0_i32_1 = arith.constant 0 : i32
    return %c0_i32, %c0_i32_0 : i32, i32
  }
  func.func @transform_5(%arg0: i32) -> (i32, i32) {
    %c0_i32 = arith.constant 0 : i32
    %c0_i32_0 = arith.constant 0 : i32
    %c0_i32_1 = arith.constant 0 : i32
    return %c0_i32, %c0_i32_0 : i32, i32
  }
  func.func @transform_6(%arg0: i32) -> (i32, i32) {
    %c0_i32 = arith.constant 0 : i32
    %c0_i32_0 = arith.constant 0 : i32
    return %arg0, %c0_i32 : i32, i32
  }
  func.func @transform_7(%arg0: i32) -> (i32, i32) {
    %c0_i32 = arith.constant 0 : i32
    %c0_i32_0 = arith.constant 0 : i32
    return %arg0, %c0_i32 : i32, i32
  }
}

module attributes {stable_mosaic.version = 11 : i64} {
  func.func @_epilogue_kernel(%arg0: i32, %arg1: memref<64x128xf32, #tpu.memory_space<vmem>>, %arg2: memref<64x128xf32, #tpu.memory_space<vmem>>, %arg3: memref<8x128xf32, #tpu.memory_space<vmem>>, %arg4: memref<64x128xf32, #tpu.memory_space<vmem>>) attributes {dimension_semantics = [#tpu.dimension_semantics<parallel>], iteration_bounds = array<i64: 4>, scalar_prefetch = 0 : i64, scratch_operands = 0 : i64, tpu.core_type = #tpu.core_type<tc>, window_params = [{transform_indices = @transform_0, window_bounds = array<i64: 64, 128>}, {transform_indices = @transform_1, window_bounds = array<i64: 64, 128>}, {pipeline_mode = #tpu.pipeline_mode<synchronous>, transform_indices = @transform_2, window_bounds = array<i64: 8, 128>}, {transform_indices = @transform_3, window_bounds = array<i64: 64, 128>}]} {
    %c0 = arith.constant 0 : index
    %c0_0 = arith.constant 0 : index
    %0 = vector.load %arg1[%c0, %c0_0] : memref<64x128xf32, #tpu.memory_space<vmem>>, vector<64x128xf32>
    %c0_1 = arith.constant 0 : index
    %c0_2 = arith.constant 0 : index
    %1 = vector.load %arg3[%c0_1, %c0_2] : memref<8x128xf32, #tpu.memory_space<vmem>>, vector<1x128xf32>
    %2 = vector.broadcast %1 : vector<1x128xf32> to vector<64x128xf32>
    %3 = arith.mulf %0, %2 : vector<64x128xf32>
    %c1 = arith.constant 1 : index
    %c0_3 = arith.constant 0 : index
    %4 = vector.load %arg3[%c1, %c0_3] : memref<8x128xf32, #tpu.memory_space<vmem>>, vector<1x128xf32>
    %5 = vector.broadcast %4 : vector<1x128xf32> to vector<64x128xf32>
    %6 = arith.addf %3, %5 : vector<64x128xf32>
    %cst = arith.constant 0.000000e+00 : f32
    %7 = vector.broadcast %cst : f32 to vector<64x128xf32>
    %8 = arith.maximumf %6, %7 : vector<64x128xf32>
    %c0_4 = arith.constant 0 : index
    %c0_5 = arith.constant 0 : index
    %9 = vector.load %arg2[%c0_4, %c0_5] : memref<64x128xf32, #tpu.memory_space<vmem>>, vector<64x128xf32>
    %10 = arith.addf %8, %9 : vector<64x128xf32>
    %c0_6 = arith.constant 0 : index
    %c0_7 = arith.constant 0 : index
    %11 = vector.load %arg4[%c0_6, %c0_7] : memref<64x128xf32, #tpu.memory_space<vmem>>, vector<64x128xf32>
    tpu.vector_store %arg4[%c0_6, %c0_7], %10 {strides = array<i32>} : memref<64x128xf32, #tpu.memory_space<vmem>>, vector<64x128xf32>,
    return
  }
  func.func @transform_0(%arg0: i32) -> (i32, i32) {
    %c0_i32 = arith.constant 0 : i32
    %c0_i32_0 = arith.constant 0 : i32
    return %arg0, %c0_i32 : i32, i32
  }
  func.func @transform_1(%arg0: i32) -> (i32, i32) {
    %c0_i32 = arith.constant 0 : i32
    %c0_i32_0 = arith.constant 0 : i32
    return %arg0, %c0_i32 : i32, i32
  }
  func.func @transform_2(%arg0: i32) -> (i32, i32) {
    %c0_i32 = arith.constant 0 : i32
    %c0_i32_0 = arith.constant 0 : i32
    %c0_i32_1 = arith.constant 0 : i32
    return %c0_i32, %c0_i32_0 : i32, i32
  }
  func.func @transform_3(%arg0: i32) -> (i32, i32) {
    %c0_i32 = arith.constant 0 : i32
    %c0_i32_0 = arith.constant 0 : i32
    return %arg0, %c0_i32 : i32, i32
  }
}

</mosaic_0001>

<bundles_post_ra>
// kernel: attention_forward.3
= control target key start
LH: loop header
LB: loop body
LE: loop exit
PB: predicated region body
PF: predicated region fallthrough
CT: control target
= control target key end

     0   :  { %s337_s9 = smov 0   ;;  %s362_s0 = inlined_call_operand.vmem [shape: f32[256,128], index: 0, kind: input, shape index: {}]   ;;  %s363_s1 = inlined_call_operand.vmem [shape: f32[256,128], index: 1, kind: input, shape index: {}]   ;;  %s364_s2 = inlined_call_operand.vmem [shape: f32[32,128], index: 2, kind: output, shape index: {}]  }
   0x1 LB: > { %s343_s10 = sadd.s32 4294967295, %s320_s9   ;;  %p298_p0 = scmp.ge.s32.totalorder %s320_s9, 1  ;;  %s320_s9 = sphi %s337_s9, %s12_s9  }
   0x2   : > { %p124_p1 = scmp.lt.s32.totalorder %s320_s9, 5 }
   0x4   : > { %p125_p2 = pnand %p298_p0, %p124_p1 }
   0x5   : > { %s299_s11 = sshll.u32 (!%p125_p2), %s343_s10, 3  ;;  %p162_p4 = scmp.lt.s32.totalorder (!%p125_p2), %s343_s10, 3 }
   0x6   : > { %128 = sbr.rel (%p125_p2) target bundleno = 50 (0x32), region = 28  ;;  %p151_p3 = scmp.lt.s32.totalorder (!%p125_p2), %s299_s11, 31 }
   0xb   : > { %s366_s11 = smov (!%p151_p3, %s299_s11), 31  ;;  %s368_s10 = smov (!%p162_p4, %s343_s10), 3  ;;  %vm224_vm0 = vcmask 1040384   ;;  %vm226_vm1 = vcmask 1041408  }
   0xc   : > { %s300_s12 = sshll.u32 %s366_s11, 3  ;;  %s303_s19 = sshll.u32 %s368_s10, 3 }
   0xd   : > { %s154_s15 = scalar_lea.vmem %s362_s0, %s300_s12  ;;  %s160_s18 = scalar_lea.vmem %s363_s1, %s300_s12 }
   0xe   : > { %v166_v0 = vld [vmem:[%s154_s15] sm:$0xff]  ;;  %v167_v1 = vld [vmem:[%s154_s15 + $0x8] sm:$0xff]  ;;  %v168_v2 = vld [vmem:[%s154_s15 + $0x10] sm:$0xff]  ;;  %s165_s22 = scalar_lea.vmem %s364_s2, %s303_s19 }
   0xf   : > { %v169_v3 = vld [vmem:[%s154_s15 + $0x18] sm:$0xff]  ;;  %v170_v4 = vld [vmem:[%s154_s15 + $0x20] sm:$0xff]  ;;  %v175_v6 = vld [vmem:[%s160_s18 + $0x8] sm:$0xff] }
  0x10   : > { %v174_v5 = vld [vmem:[%s160_s18] sm:$0xff]  ;;  %v176_v7 = vld [vmem:[%s160_s18 + $0x10] sm:$0xff]  ;;  %v177_v8 = vld [vmem:[%s160_s18 + $0x18] sm:$0xff]  ;;  %v183_v11 = vadd.f32 %v175_v6, %v167_v1 }
  0x11   : > { %v182_v9 = vadd.f32 %v174_v5, %v166_v0  ;;  %v178_v10 = vld [vmem:[%s160_s18 + $0x20] sm:$0xff]  ;;  %v184_v12 = vadd.f32 %v176_v7, %v168_v2  ;;  %v185_v13 = vadd.f32 %v177_v8, %v169_v3  ;;  %v171_v14 = vld [vmem:[%s154_s15 + $0x28] sm:$0xff]  ;;  %v172_v21 = vld [vmem:[%s154_s15 + $0x30] sm:$0xff] }
  0x12   : > { %v179_v15 = vld [vmem:[%s160_s18 + $0x28] sm:$0xff]  ;;  %v186_v17 = vadd.f32 %v178_v10, %v170_v4  ;;  %v204_v19 = vmul.f32 %v183_v11, %v183_v11  ;;  %v180_v22 = vld [vmem:[%s160_s18 + $0x30] sm:$0xff]  ;;  %v173_v27 = vld [vmem:[%s154_s15 + $0x38] sm:$0xff] }
  0x13   : > { %v203_v16 = vmul.f32 %v182_v9, %v182_v9  ;;  %v190_v18 = vadd.f32 %v183_v11, %v182_v9  ;;  %v205_v20 = vmul.f32 %v184_v12, %v184_v12  ;;  %v187_v23 = vadd.f32 %v179_v15, %v171_v14  ;;  %v181_v28 = vld [vmem:[%s160_s18 + $0x38] sm:$0xff] }
  0x14   : > { %v206_v25 = vmul.f32 %v185_v13, %v185_v13  ;;  %v188_v29 = vadd.f32 %v180_v22, %v172_v21  ;;  %v207_v31 = vmul.f32 %v186_v17, %v186_v17  ;;  %v189_v33 = vadd.f32 %v181_v28, %v173_v27 }
  0x15   : > { %v191_v24 = vadd.f32 %v190_v18, %v184_v12  ;;  %v211_v26 = vadd.f32 %v204_v19, %v203_v16  ;;  %v208_v35 = vmul.f32 %v187_v23, %v187_v23 }
  0x16   : > { %v209_v38 = vmul.f32 %v188_v29, %v188_v29  ;;  %v210_v41 = vmul.f32 %v189_v33, %v189_v33 }
  0x17   : > { %v192_v30 = vadd.f32 %v191_v24, %v185_v13  ;;  %v212_v32 = vadd.f32 %v211_v26, %v205_v20 }
  0x19   : > { %v193_v34 = vadd.f32 %v192_v30, %v186_v17  ;;  %v213_v36 = vadd.f32 %v212_v32, %v206_v25 }
  0x1b   : > { %v194_v37 = vadd.f32 %v193_v34, %v187_v23  ;;  %v214_v39 = vadd.f32 %v213_v36, %v207_v31 }
  0x1d   : > { %v195_v40 = vadd.f32 %v194_v37, %v188_v29  ;;  %v215_v42 = vadd.f32 %v214_v39, %v208_v35 }
  0x1f   : > { %v196_v43 = vadd.f32 %v195_v40, %v189_v33  ;;  %v216_v44 = vadd.f32 %v215_v42, %v209_v38 }
  0x21   : > { %v197_v45 = vrot.slane %v196_v43, 4  ;;  %v217_v46 = vadd.f32 %v216_v44, %v210_v41 }
  0x23   : > { %v198_v47 = vadd.f32 %v197_v45, %v196_v43  ;;  %v218_v48 = vrot.slane %v217_v46, 4 }
  0x25   : > { %v199_v49 = vrot.slane %v198_v47, 2  ;;  %v219_v50 = vadd.f32 %v218_v48, %v217_v46 }
  0x27   : > { %v200_v51 = vadd.f32 %v199_v49, %v198_v47  ;;  %v220_v52 = vrot.slane %v219_v50, 2 }
  0x29   : > { %v201_v53 = vrot.slane %v200_v51, 1  ;;  %v221_v54 = vadd.f32 %v220_v52, %v219_v50 }
  0x2b   : > { %v202_v55 = vadd.f32 %v201_v53, %v200_v51  ;;  %v222_v56 = vrot.slane %v221_v54, 1 }
  0x2d   : > { %v223_v57 = vadd.f32 %v222_v56, %v221_v54 }
  0x2f   : > { %v225_v58 = vsel %vm224_vm0, %v202_v55, %v223_v57 }
  0x30   : > { %v227_v59 = vsel %vm226_vm1, %v225_v58, 0.0 }
  0x31   : > { %228 = vst [vmem:[%s165_s22] sm:$0xff] %v227_v59 }
  0x32 PF: > { %s12_s9 = sadd.s32 1, %s320_s9  }
  0x33   : > { %p9_p5 = scmp.ge.s32.totalorder %s12_s9, 6  }
  0x35   :  { %11 = sbr.rel (!%p9_p5) target bundleno = 1 (0x1), region = 61 }

// kernel: attention_forward.5
= control target key start
LH: loop header
LB: loop body
LE: loop exit
PB: predicated region body
PF: predicated region fallthrough
CT: control target
= control target key end

     0   :  { %s381_s12 = smov 0   ;;  %s422_s0 = inlined_call_operand.vmem [shape: f32[256,128], index: 0, kind: input, shape index: {}]   ;;  %s423_s1 = inlined_call_operand.vmem [shape: f32[256,128], index: 1, kind: input, shape index: {}, may-alias: {1,3}]   ;;  %s424_s2 = inlined_call_operand.vmem [shape: f32[8,128], index: 2, kind: input, shape index: {}]   ;;  %s425_s3 = inlined_call_operand.vmem [shape: f32[256,128], index: 3, kind: output, shape index: {}, may-alias: {1,3}]  }
   0x1 LB: > { %s330_s13 = sadd.s32 4294967295, %s359_s12   ;;  %p334_p0 = scmp.ge.s32.totalorder %s359_s12, 1  ;;  %s359_s12 = sphi %s381_s12, %s13_s12  }
   0x2   : > { %p149_p1 = scmp.lt.s32.totalorder %s359_s12, 5 }
   0x4   : > { %p150_p2 = pnand %p334_p0, %p149_p1 }
   0x5   : > { %s335_s14 = sshll.u32 (!%p150_p2), %s330_s13, 3 }
   0x6   : > { %153 = sbr.rel (%p150_p2) target bundleno = 27 (0x1b), region = 32  ;;  %p179_p3 = scmp.lt.s32.totalorder (!%p150_p2), %s335_s14, 31 }
   0xb   : > { %s427_s14 = smov (!%p179_p3, %s335_s14), 31  ;;  %v341_v0 = vld [vmem:[%s424_s2] ss:$0 sm:$0xff]  ;;  %v342_v1 = vld [vmem:[%s424_s2 + $0x1] ss:$0 sm:$0xff] }
   0xc   : > { %s389_s15 = sshll.u32 %s427_s14, 3 }
   0xd   : > { %s182_s20 = scalar_lea.vmem %s422_s0, %s389_s15  ;;  %s405_s25 = scalar_lea.vmem %s423_s1, %s389_s15 }
   0xe   : > { %v196_v2 = vld [vmem:[%s182_s20] sm:$0xff]  ;;  %v197_v3 = vld [vmem:[%s182_s20 + $0x8] sm:$0xff]  ;;  %v198_v4 = vld [vmem:[%s182_s20 + $0x10] sm:$0xff]  ;;  %s194_s28 = scalar_lea.vmem %s425_s3, %s389_s15 }
   0xf   : > { %v199_v5 = vld [vmem:[%s182_s20 + $0x18] sm:$0xff]  ;;  %v200_v6 = vld [vmem:[%s182_s20 + $0x20] sm:$0xff]  ;;  %v201_v7 = vld [vmem:[%s182_s20 + $0x28] sm:$0xff]  ;;  %v209_v8 = vmul.f32 %v341_v0, %v196_v2  ;;  %v210_v9 = vmul.f32 %v341_v0, %v197_v3  ;;  %v211_v10 = vmul.f32 %v341_v0, %v198_v4 }
  0x10   : > { %v202_v11 = vld [vmem:[%s182_s20 + $0x30] sm:$0xff]  ;;  %v203_v12 = vld [vmem:[%s182_s20 + $0x38] sm:$0xff]  ;;  %v212_v13 = vmul.f32 %v341_v0, %v199_v5  ;;  %v213_v14 = vmul.f32 %v341_v0, %v200_v6  ;;  %v214_v15 = vmul.f32 %v341_v0, %v201_v7  ;;  %v238_v24 = vld [vmem:[%s405_s25] sm:$0xff] }
  0x11   : > { %v215_v16 = vmul.f32 %v341_v0, %v202_v11  ;;  %v216_v17 = vmul.f32 %v341_v0, %v203_v12  ;;  %v222_v18 = vadd.f32 %v342_v1, %v209_v8  ;;  %v223_v19 = vadd.f32 %v342_v1, %v210_v9  ;;  %v239_v25 = vld [vmem:[%s405_s25 + $0x8] sm:$0xff]  ;;  %v240_v26 = vld [vmem:[%s405_s25 + $0x10] sm:$0xff]  ;;  %v241_v31 = vld [vmem:[%s405_s25 + $0x18] sm:$0xff] }
  0x12   : > { %v224_v20 = vadd.f32 %v342_v1, %v211_v10  ;;  %v225_v21 = vadd.f32 %v342_v1, %v212_v13  ;;  %v226_v22 = vadd.f32 %v342_v1, %v213_v14  ;;  %v227_v23 = vadd.f32 %v342_v1, %v214_v15  ;;  %v242_v32 = vld [vmem:[%s405_s25 + $0x20] sm:$0xff]  ;;  %v243_v33 = vld [vmem:[%s405_s25 + $0x28] sm:$0xff]  ;;  %v244_v38 = vld [vmem:[%s405_s25 + $0x30] sm:$0xff] }
  0x13   : > { %v228_v27 = vadd.f32 %v342_v1, %v215_v16  ;;  %v229_v28 = vadd.f32 %v342_v1, %v216_v17  ;;  %v230_v29 = vmax.f32 %v222_v18, 0.0  ;;  %v231_v30 = vmax.f32 %v223_v19, 0.0  ;;  %v245_v39 = vld [vmem:[%s405_s25 + $0x38] sm:$0xff] }
  0x14   : > { %v232_v34 = vmax.f32 %v224_v20, 0.0  ;;  %v233_v35 = vmax.f32 %v225_v21, 0.0  ;;  %v234_v36 = vmax.f32 %v226_v22, 0.0  ;;  %v235_v37 = vmax.f32 %v227_v23, 0.0 }
  0x15   : > { %v236_v40 = vmax.f32 %v228_v27, 0.0  ;;  %v237_v41 = vmax.f32 %v229_v28, 0.0  ;;  %v246_v42 = vadd.f32 %v238_v24, %v230_v29  ;;  %v247_v43 = vadd.f32 %v239_v25, %v231_v30 }
  0x16   : > { %v248_v44 = vadd.f32 %v240_v26, %v232_v34  ;;  %v249_v45 = vadd.f32 %v241_v31, %v233_v35  ;;  %v250_v46 = vadd.f32 %v242_v32, %v234_v36  ;;  %v251_v47 = vadd.f32 %v243_v33, %v235_v37 }
  0x17   : > { %v252_v48 = vadd.f32 %v244_v38, %v236_v40  ;;  %v253_v49 = vadd.f32 %v245_v39, %v237_v41  ;;  %254 = vst [vmem:[%s194_s28] sm:$0xff] %v246_v42  ;;  %255 = vst [vmem:[%s194_s28 + $0x8] sm:$0xff] %v247_v43 }
  0x18   : > { %256 = vst [vmem:[%s194_s28 + $0x10] sm:$0xff] %v248_v44  ;;  %257 = vst [vmem:[%s194_s28 + $0x18] sm:$0xff] %v249_v45 }
  0x19   : > { %258 = vst [vmem:[%s194_s28 + $0x20] sm:$0xff] %v250_v46  ;;  %259 = vst [vmem:[%s194_s28 + $0x28] sm:$0xff] %v251_v47 }
  0x1a   : > { %260 = vst [vmem:[%s194_s28 + $0x30] sm:$0xff] %v252_v48  ;;  %261 = vst [vmem:[%s194_s28 + $0x38] sm:$0xff] %v253_v49 }
  0x1b PF: > { %s13_s12 = sadd.s32 1, %s359_s12  }
  0x1c   : > { %p10_p4 = scmp.ge.s32.totalorder %s13_s12, 6  }
  0x1e   :  { %12 = sbr.rel (!%p10_p4) target bundleno = 1 (0x1), region = 65 }

// kernel: attention_forward.4
= control target key start
LH: loop header
LB: loop body
LE: loop exit
PB: predicated region body
PF: predicated region fallthrough
CT: control target
= control target key end

     0   :  { %s1248_s24 = smov 0   ;;  %s1473_s0 = inlined_call_operand.vmem [shape: f32[256,128], index: 0, kind: input, shape index: {}]   ;;  %s1474_s1 = inlined_call_operand.vmem [shape: f32[256,128], index: 1, kind: input, shape index: {}]   ;;  %s1475_s2 = inlined_call_operand.vmem [shape: f32[256,128], index: 2, kind: input, shape index: {}]   ;;  %s1476_s3 = inlined_call_operand.vmem [shape: bf16[128,256], index: 3, kind: input, shape index: {}]   ;;  %s1477_s4 = inlined_call_operand.vmem [shape: bf16[128,128], index: 4, kind: input, shape index: {}]   ;;  %s1478_s5 = inlined_call_operand.vmem [shape: f32[8,128], index: 5, kind: input, shape index: {}]   ;;  %s1479_s6 = inlined_call_operand.vmem [shape: f32[256,128], index: 6, kind: output, shape index: {0}]   ;;  %s1480_s7 = inlined_call_operand.vmem [shape: f32[32,128], index: 7, kind: output, shape index: {1}]  }
   0x1 LB: > { %s1254_s25 = sadd.s32 4294967295, %s1205_s24   ;;  %p1047_p0 = scmp.ge.s32.totalorder %s1205_s24, 1  ;;  %s1205_s24 = sphi %s1248_s24, %s18_s24  }
   0x2   : > { %p263_p1 = scmp.lt.s32.totalorder %s1205_s24, 5 }
   0x4   : > { %p264_p2 = pnand %p1047_p0, %p263_p1 }
   0x5   : > { %s1048_s28 = sshll.u32 (!%p264_p2), %s1254_s25, 3  ;;  %s1087_s11 = sshll.u32 (!%p264_p2), %s1254_s25, 6 }
   0x6   : > { %267 = sbr.rel (%p264_p2) target bundleno = 810 (0x32a), region = 44  ;;  %p310_p3 = scmp.lt.s32.totalorder (!%p264_p2), %s1048_s28, 31 }
   0x7   : > { %p333_p4 = scmp.lt.s32.totalorder (!%p264_p2), %s1254_s25, 3 }
   0xb   : > { %v1135_v0 = vld [vmem:[%s1476_s3 + $0x74] ss:$8 sps:$4 sm:$0xff]   ;;  %v1137_v1 = vld [vmem:[%s1476_s3 + $0x70] ss:$8 sps:$4 sm:$0xff]   ;;  %v1207_v2 = vmov 0   ;;  %s1482_s28 = smov (!%p310_p3, %s1048_s28), 31 }
   0xc   : > { %520 = vmatprep.mubr.bf16.mxu0 %v1207_v2  ;;  %488 = vmatprep.subr.bf16.mxu0 %v1135_v0  ;;  %v1138_v3 = vld [vmem:[%s1476_s3 + $0x64] ss:$8 sps:$4 sm:$0xff]   ;;  %v1140_v4 = vld [vmem:[%s1476_s3 + $0x60] ss:$8 sps:$4 sm:$0xff]   ;;  %v1141_v5 = vld [vmem:[%s1476_s3 + $0x54] ss:$8 sps:$4 sm:$0xff]  }
   0xd   : > { %489 = vmatpush1.bf16.msra.mxu0 %v1137_v1  ;;  %v1143_v6 = vld [vmem:[%s1476_s3 + $0x50] ss:$8 sps:$4 sm:$0xff]   ;;  %v1144_v7 = vld [vmem:[%s1476_s3 + $0x44] ss:$8 sps:$4 sm:$0xff]   ;;  %s1281_s18 = sshll.u32 %s1482_s28, 3  ;;  %s1484_s25 = smov (!%p333_p4, %s1254_s25), 3 }
   0xe   : > { %490 = vmatprep.subr.bf16.mxu0 %v1138_v3  ;;  %v1146_v8 = vld [vmem:[%s1476_s3 + $0x40] ss:$8 sps:$4 sm:$0xff]   ;;  %s1290_s23 = scalar_lea.vmem %s1473_s0, %s1281_s18  ;;  %v1147_v9 = vld [vmem:[%s1476_s3 + $0x34] ss:$8 sps:$4 sm:$0xff]   ;;  %s1299_s30 = scalar_lea.vmem %s1474_s1, %s1281_s18  ;;  %v1149_v10 = vld [vmem:[%s1476_s3 + $0x30] ss:$8 sps:$4 sm:$0xff]  }
   0xf   : > { %v338_v11 = vld [vmem:[%s1290_s23] sm:$0xff]  ;;  %v339_v12 = vld [vmem:[%s1290_s23 + $0x8] sm:$0xff]  ;;  %v1153_v18 = vld [vmem:[%s1476_s3 + $0x14] ss:$8 sps:$4 sm:$0xff]   ;;  %s1351_s8 = scalar_lea.vmem %s1475_s2, %s1281_s18  ;;  %s1455_s16 = scalar_lea.vmem %s1479_s6, %s1281_s18  ;;  %vm927_vm8 = vcmask 1040384   ;;  %vm929_vm9 = vcmask 1041408  }
  0x10   : > { %v346_v13 = vld [vmem:[%s1299_s30] sm:$0xff]  ;;  %v347_v14 = vld [vmem:[%s1299_s30 + $0x8] sm:$0xff]  ;;  %v1155_v21 = vld [vmem:[%s1476_s3 + $0x10] ss:$8 sps:$4 sm:$0xff]   ;;  %s1056_s18 = sshll.u32 %s1484_s25, 3 }
  0x11   : > { %491 = vmatpush1.bf16.msra.mxu0 %v1140_v4  ;;  %v1150_v15 = vld [vmem:[%s1476_s3 + $0x24] ss:$8 sps:$4 sm:$0xff]   ;;  %v1152_v16 = vld [vmem:[%s1476_s3 + $0x20] ss:$8 sps:$4 sm:$0xff]   ;;  %v354_v19 = vadd.f32 %v346_v13, %v338_v11  ;;  %v355_v20 = vadd.f32 %v347_v14, %v339_v12  ;;  %v340_v25 = vld [vmem:[%s1290_s23 + $0x10] sm:$0xff]  ;;  %s336_s20 = scalar_lea.vmem %s1480_s7, %s1056_s18 }
  0x12   : > { %492 = vmatprep.subr.bf16.mxu0 %v1141_v5  ;;  %v1057_v17 = vld [vmem:[%s1478_s5] ss:$0 sm:$0xff]  ;;  %v1058_v24 = vld [vmem:[%s1478_s5 + $0x1] ss:$0 sm:$0xff]  ;;  %v341_v26 = vld [vmem:[%s1290_s23 + $0x18] sm:$0xff] }
  0x13   : > { %v367_v22 = vmul.f32 %v1057_v17, %v354_v19  ;;  %v368_v23 = vmul.f32 %v1057_v17, %v355_v20  ;;  %v348_v27 = vld [vmem:[%s1299_s30 + $0x10] sm:$0xff]  ;;  %v349_v28 = vld [vmem:[%s1299_s30 + $0x18] sm:$0xff]  ;;  %v1156_v29 = vld [vmem:[%s1476_s3 + $0x4] ss:$8 sps:$4 sm:$0xff]  }
  0x14   : > { %v356_v32 = vadd.f32 %v348_v27, %v340_v25  ;;  %v357_v33 = vadd.f32 %v349_v28, %v341_v26  ;;  %v1158_v34 = vld [vmem:[%s1476_s3] ss:$8 sps:$4 sm:$0xff]   ;;  %v344_v49 = vld [vmem:[%s1290_s23 + $0x30] sm:$0xff]  ;;  %v345_v50 = vld [vmem:[%s1290_s23 + $0x38] sm:$0xff] }
  0x15   : > { %493 = vmatpush1.bf16.msra.mxu0 %v1143_v6  ;;  %v380_v30 = vadd.f32 %v1058_v24, %v367_v22  ;;  %v381_v31 = vadd.f32 %v1058_v24, %v368_v23  ;;  %v342_v38 = vld [vmem:[%s1290_s23 + $0x20] sm:$0xff]  ;;  %v343_v39 = vld [vmem:[%s1290_s23 + $0x28] sm:$0xff]  ;;  %v352_v51 = vld [vmem:[%s1299_s30 + $0x30] sm:$0xff] }
  0x16   : > { %494 = vmatprep.subr.bf16.mxu0 %v1144_v7  ;;  %v369_v36 = vmul.f32 %v1057_v17, %v356_v32  ;;  %v370_v37 = vmul.f32 %v1057_v17, %v357_v33  ;;  %v350_v40 = vld [vmem:[%s1299_s30 + $0x20] sm:$0xff]  ;;  %v351_v41 = vld [vmem:[%s1299_s30 + $0x28] sm:$0xff]  ;;  %v353_v52 = vld [vmem:[%s1299_s30 + $0x38] sm:$0xff]  ;;  %v360_v55 = vadd.f32 %v352_v51, %v344_v49 }
  0x17   : > { %v388_v35 = vpack.c.bf16 %v381_v31, %v380_v30  ;;  %v358_v44 = vadd.f32 %v350_v40, %v342_v38  ;;  %v359_v45 = vadd.f32 %v351_v41, %v343_v39  ;;  %v361_v56 = vadd.f32 %v353_v52, %v345_v50  ;;  %v1075_v63 = vld [vmem:[%s1478_s5 + $0x2] ss:$0 sm:$0xff]  ;;  %v588_v7 = vld [vmem:[%s1351_s8 + $0x8] sm:$0xff]  ;;  %v589_v13 = vld [vmem:[%s1351_s8 + $0x10] sm:$0xff] }
  0x18   : > { %v382_v42 = vadd.f32 %v1058_v24, %v369_v36  ;;  %v383_v43 = vadd.f32 %v1058_v24, %v370_v37  ;;  %v373_v58 = vmul.f32 %v1057_v17, %v360_v55  ;;  %v587_v1 = vld [vmem:[%s1351_s8] sm:$0xff]  ;;  %v590_v19 = vld [vmem:[%s1351_s8 + $0x18] sm:$0xff]  ;;  %v592_v31 = vld [vmem:[%s1351_s8 + $0x28] sm:$0xff] }
  0x19   : > { %495 = vmatpush1.bf16.msra.mxu0 %v1146_v8  ;;  %v371_v47 = vmul.f32 %v1057_v17, %v358_v44  ;;  %v372_v48 = vmul.f32 %v1057_v17, %v359_v45  ;;  %v374_v59 = vmul.f32 %v1057_v17, %v361_v56  ;;  %v591_v25 = vld [vmem:[%s1351_s8 + $0x20] sm:$0xff]  ;;  %v593_v37 = vld [vmem:[%s1351_s8 + $0x30] sm:$0xff] }
  0x1a   : > { %496 = vmatprep.subr.bf16.mxu0 %v1147_v9  ;;  %v389_v46 = vpack.c.bf16 %v383_v43, %v382_v42  ;;  %v386_v60 = vadd.f32 %v1058_v24, %v373_v58  ;;  %v594_v43 = vld [vmem:[%s1351_s8 + $0x38] sm:$0xff] }
  0x1b   : > { %v384_v53 = vadd.f32 %v1058_v24, %v371_v47  ;;  %v385_v54 = vadd.f32 %v1058_v24, %v372_v48  ;;  %v387_v61 = vadd.f32 %v1058_v24, %v374_v59 }
  0x1d   : > { %497 = vmatpush1.bf16.msra.mxu0 %v1149_v10  ;;  %v390_v57 = vpack.c.bf16 %v385_v54, %v384_v53  ;;  %v391_v62 = vpack.c.bf16 %v387_v61, %v386_v60 }
  0x1e   : > { %498 = vmatprep.subr.bf16.mxu0 %v1150_v15 }
  0x21   : > { %499 = vmatpush1.bf16.msra.mxu0 %v1152_v16 }
  0x22   : > { %500 = vmatprep.subr.bf16.mxu0 %v1153_v18 }
  0x25   : > { %501 = vmatpush1.bf16.msra.mxu0 %v1155_v21 }
  0x26   : > { %502 = vmatprep.subr.bf16.mxu0 %v1156_v29 }
  0x29   : > { %503 = vmatpush1.bf16.msra.mxu0 %v1158_v34 }
  0x2c   : > { %521 = vmatmul.mubr.bf16.vlgmr.msra.gmra.mxu0 %v388_v35 }
  0x2d   : > { %530 = vmatprep.mubr.bf16.mxu0 %v1207_v2 }
  0x34   : > { %531 = vmatmul.mubr.bf16.gmra.mxu0 %v389_v46 }
  0x35   : > { %540 = vmatprep.mubr.bf16.mxu0 %v1207_v2 }
  0x3c   : > { %541 = vmatmul.mubr.bf16.gmra.mxu0 %v390_v57 }
  0x3d   : > { %550 = vmatprep.mubr.bf16.mxu0 %v1207_v2  ;;  %v1077_v2 = vld [vmem:[%s1478_s5 + $0x5] ss:$0 sm:$0xff] }
  0x44   : > { %551 = vmatmul.mubr.bf16.gmra.mxu0 %v391_v62 }
  0xec   : > { %v522_v0 = vpop.f32.mrf.mxu0 }
  0xed   : > { %v566_v3 = vadd.f32 %v1075_v63, %v522_v0 }
  0xee   : > { %v1357_v4 = vpop.f32.mrf.mxu0 }
  0xef   : > { %v595_v5 = vmul.f32 %v587_v1, %v566_v3 }
  0xf0   : > { %v526_v6 = vpop.f32.mrf.mxu0 }
  0xf1   : > { %v567_v8 = vadd.f32 %v1075_v63, %v526_v6  ;;  %v608_v9 = vadd.f32 %v1077_v2, %v595_v5 }
  0xf2   : > { %v1363_v10 = vpop.f32.mrf.mxu0 }
  0xf3   : > { %v596_v11 = vmul.f32 %v588_v7, %v567_v8  ;;  %616 = vmax.xlane.f32.xlu0 %v608_v9 }
  0xf4   : > { %v532_v12 = vpop.f32.mrf.mxu0 }
  0xf5   : > { %v568_v14 = vadd.f32 %v1075_v63, %v532_v12  ;;  %v609_v15 = vadd.f32 %v1077_v2, %v596_v11 }
  0xf6   : > { %v1366_v16 = vpop.f32.mrf.mxu0 }
  0xf7   : > { %v597_v17 = vmul.f32 %v589_v13, %v568_v14  ;;  %618 = vmax.xlane.f32.xlu0 %v609_v15 }
  0xf8   : > { %v536_v18 = vpop.f32.mrf.mxu0 }
  0xf9   : > { %v569_v20 = vadd.f32 %v1075_v63, %v536_v18  ;;  %v610_v21 = vadd.f32 %v1077_v2, %v597_v17  ;;  %v1161_v18 = vld [vmem:[%s1477_s4 + $0x28] sm:$0xff]  }
  0xfa   : > { %v1369_v22 = vpop.f32.mrf.mxu0 }
  0xfb   : > { %v598_v23 = vmul.f32 %v590_v19, %v569_v20  ;;  %620 = vmax.xlane.f32.xlu1 %v610_v21  ;;  %v1162_v20 = vld [vmem:[%s1477_s4 + $0x20] sm:$0xff]  }
  0xfc   : > { %v542_v24 = vpop.f32.mrf.mxu0 }
  0xfd   : > { %v570_v26 = vadd.f32 %v1075_v63, %v542_v24  ;;  %v611_v27 = vadd.f32 %v1077_v2, %v598_v23  ;;  %v1163_v23 = vld [vmem:[%s1477_s4 + $0x18] sm:$0xff]  }
  0xfe   : > { %v1372_v28 = vpop.f32.mrf.mxu0 }
  0xff   : > { %v599_v29 = vmul.f32 %v591_v25, %v570_v26  ;;  %622 = vmax.xlane.f32.xlu1 %v611_v27  ;;  %v1164_v25 = vld [vmem:[%s1477_s4 + $0x10] sm:$0xff]   ;;  %v1165_v26 = vld [vmem:[%s1477_s4 + $0x8] sm:$0xff]  }
 0x100   : > { %v546_v30 = vpop.f32.mrf.mxu0 }
 0x101   : > { %v571_v32 = vadd.f32 %v1075_v63, %v546_v30  ;;  %v612_v33 = vadd.f32 %v1077_v2, %v599_v29 }
 0x102   : > { %v1375_v34 = vpop.f32.mrf.mxu0 }
 0x103   : > { %v600_v35 = vmul.f32 %v592_v31, %v571_v32  ;;  %624 = vmax.xlane.f32.xlu0 %v612_v33 }
 0x104   : > { %v552_v36 = vpop.f32.mrf.mxu0 }
 0x105   : > { %v572_v38 = vadd.f32 %v1075_v63, %v552_v36  ;;  %v613_v39 = vadd.f32 %v1077_v2, %v600_v35  ;;  %v1076_v35 = vld [vmem:[%s1478_s5 + $0x3] ss:$0 sm:$0xff] }
 0x106   : > { %v1378_v40 = vpop.f32.mrf.mxu0 }
 0x107   : > { %v601_v41 = vmul.f32 %v593_v37, %v572_v38  ;;  %626 = vmax.xlane.f32.xlu1 %v613_v39 }
 0x108   : > { %v556_v42 = vpop.f32.mrf.mxu0 }
 0x109   : > { %v573_v44 = vadd.f32 %v1075_v63, %v556_v42  ;;  %v614_v45 = vadd.f32 %v1077_v2, %v601_v41  ;;  %v580_v41 = vadd.f32 %v1076_v35, %v1363_v10 }
 0x10b   : > { %v602_v46 = vmul.f32 %v594_v43, %v573_v44  ;;  %628 = vmax.xlane.f32.xlu0 %v614_v45 }
 0x10d   : > { %v615_v47 = vadd.f32 %v1077_v2, %v602_v46 }
 0x10f   : > { %630 = vmax.xlane.f32.xlu1 %v615_v47 }
 0x17c   : > { %v617_v48 = vpop.xlane.xlu0 %616 }
 0x17d   : > { %v632_v49 = vsub.f32 %v608_v9, %v617_v48  ;;  %v1159_v9 = vld [vmem:[%s1477_s4 + $0x38] sm:$0xff]  }
 0x17e   : > { %1102 = vmatprep.subr.bf16.mxu1 %v1159_v9 }
 0x17f   : > { %v640_v50 = vmul.f32 1.442695, %v632_v49  ;;  %1103 = vmatpush3.bf16.msra.mxu1 %v1159_v9 }
 0x180   : > { %v619_v51 = vpop.xlane.xlu0 %618 }
 0x181   : > { %1167 = vpow2.f32 %v640_v50  ;;  %v633_v52 = vsub.f32 %v609_v15, %v619_v51  ;;  %v1160_v15 = vld [vmem:[%s1477_s4 + $0x30] sm:$0xff]   ;;  %v581_v51 = vadd.f32 %v1076_v35, %v1366_v16 }
 0x182   : > { %1104 = vmatprep.subr.bf16.mxu1 %v1160_v15 }
 0x183   : > { %v642_v53 = vmul.f32 1.442695, %v633_v52  ;;  %1105 = vmatpush3.bf16.msra.mxu1 %v1160_v15  ;;  %v1078_v15 = vld [vmem:[%s1478_s5 + $0x4] ss:$0 sm:$0xff] }
 0x184   : > { %v621_v54 = vpop.xlane.xlu1 %620  ;;  %1106 = vmatprep.subr.bf16.mxu1 %v1161_v18 }
 0x185   : > { %1169 = vpow2.f32 %v642_v53  ;;  %v634_v55 = vsub.f32 %v610_v21, %v621_v54 }
 0x187   : > { %v644_v56 = vmul.f32 1.442695, %v634_v55  ;;  %1107 = vmatpush3.bf16.msra.mxu1 %v1161_v18 }
 0x188   : > { %v623_v57 = vpop.xlane.xlu1 %622  ;;  %1108 = vmatprep.subr.bf16.mxu1 %v1162_v20 }
 0x189   : > { %1171 = vpow2.f32 %v644_v56  ;;  %v635_v58 = vsub.f32 %v611_v27, %v623_v57  ;;  %v1166_v27 = vld [vmem:[%s1477_s4] sm:$0xff]  }
 0x18b   : > { %v646_v59 = vmul.f32 1.442695, %v635_v58  ;;  %1109 = vmatpush3.bf16.msra.mxu1 %v1162_v20 }
 0x18c   : > { %v625_v60 = vpop.xlane.xlu0 %624  ;;  %1110 = vmatprep.subr.bf16.mxu1 %v1163_v23 }
 0x18d   : > { %1173 = vpow2.f32 %v646_v59  ;;  %v636_v61 = vsub.f32 %v612_v33, %v625_v60  ;;  %v583_v59 = vadd.f32 %v1076_v35, %v1372_v28  ;;  %v584_v60 = vadd.f32 %v1076_v35, %v1375_v34 }
 0x18e   : > { %v1381_v62 = vpop.eup %1167 }
 0x18f   : > { %v648_v63 = vmul.f32 1.442695, %v636_v61  ;;  %656 = vadd.xlane.f32.xlu0 %v1381_v62  ;;  %1111 = vmatpush3.bf16.msra.mxu1 %v1163_v23 }
 0x190   : > { %v627_v0 = vpop.xlane.xlu1 %626  ;;  %1112 = vmatprep.subr.bf16.mxu1 %v1164_v25 }
 0x191   : > { %1175 = vpow2.f32 %v648_v63  ;;  %v637_v1 = vsub.f32 %v613_v39, %v627_v0  ;;  %v579_v39 = vadd.f32 %v1076_v35, %v1357_v4  ;;  %v582_v4 = vadd.f32 %v1076_v35, %v1369_v22  ;;  %v558_v0 = vpop.f32.mrf.mxu0 }
 0x192   : > { %v1384_v3 = vpop.eup %1169 }
 0x193   : > { %v650_v2 = vmul.f32 1.442695, %v637_v1  ;;  %658 = vadd.xlane.f32.xlu1 %v1384_v3  ;;  %1113 = vmatpush3.bf16.msra.mxu1 %v1164_v25 }
 0x194   : > { %v629_v5 = vpop.xlane.xlu0 %628  ;;  %1114 = vmatprep.subr.bf16.mxu1 %v1165_v26 }
 0x195   : > { %1177 = vpow2.f32 %v650_v2  ;;  %v638_v6 = vsub.f32 %v614_v45, %v629_v5  ;;  %v585_v2 = vadd.f32 %v1076_v35, %v1378_v40  ;;  %v586_v5 = vadd.f32 %v1076_v35, %v558_v0 }
 0x196   : > { %v1387_v7 = vpop.eup %1171 }
 0x197   : > { %v652_v8 = vmul.f32 1.442695, %v638_v6  ;;  %660 = vadd.xlane.f32.xlu0 %v1387_v7  ;;  %1115 = vmatpush3.bf16.msra.mxu1 %v1165_v26 }
 0x198   : > { %v631_v11 = vpop.xlane.xlu1 %630  ;;  %1116 = vmatprep.subr.bf16.mxu1 %v1166_v27 }
 0x199   : > { %1179 = vpow2.f32 %v652_v8  ;;  %v639_v12 = vsub.f32 %v615_v47, %v631_v11  ;;  %v834_v8 = vlaneseq }
 0x19a   : > { %v1393_v13 = vpop.eup %1173 }
 0x19b   : > { %v654_v14 = vmul.f32 1.442695, %v639_v12  ;;  %662 = vadd.xlane.f32.xlu1 %v1393_v13  ;;  %1117 = vmatpush3.bf16.msra.mxu1 %v1166_v27  ;;  %v835_v9 = vshrl.u32 %v834_v8, 7  ;;  %v844_v12 = vstv %s1087_s11 }
 0x19d   : > { %1181 = vpow2.f32 %v654_v14  ;;  %v837_v11 = vadd.s32 16, %v835_v9  ;;  %v838_v14 = vadd.s32 24, %v835_v9  ;;  %v845_v40 = vadd.s32 %v844_v12, %v835_v9 }
 0x19e   : > { %v1399_v17 = vpop.eup %1175 }
 0x19f   : > { %664 = vadd.xlane.f32.xlu0 %v1399_v17  ;;  %vm853_vm1 = vcmp.lt.s32.totalorder %v845_v40, 200 }
 0x1a2   : > { %v1405_v19 = vpop.eup %1177 }
 0x1a3   : > { %666 = vadd.xlane.f32.xlu1 %v1405_v19 }
 0x1a6   : > { %v1411_v21 = vpop.eup %1179 }
 0x1a7   : > { %668 = vadd.xlane.f32.xlu0 %v1411_v21 }
 0x1aa   : > { %v1417_v24 = vpop.eup %1181 }
 0x1ab   : > { %670 = vadd.xlane.f32.xlu1 %v1417_v24 }
 0x218   : > { %v657_v29 = vpop.xlane.xlu0 %656 }
 0x219   : > { %1183 = vrcp.f32 %v657_v29 }
 0x21c   : > { %v659_v30 = vpop.xlane.xlu1 %658 }
 0x21d   : > { %1185 = vrcp.f32 %v659_v30 }
 0x220   : > { %v661_v31 = vpop.xlane.xlu0 %660 }
 0x221   : > { %1187 = vrcp.f32 %v661_v31 }
 0x224   : > { %v663_v32 = vpop.xlane.xlu1 %662 }
 0x225   : > { %1189 = vrcp.f32 %v663_v32 }
 0x226   : > { %v1184_v33 = vpop.eup %1183 }
 0x227   : > { %v680_v37 = vmul.f32 %v1184_v33, %v1381_v62  ;;  %v841_v33 = vadd.s32 48, %v835_v9 }
 0x228   : > { %v665_v36 = vpop.xlane.xlu0 %664 }
 0x229   : > { %1191 = vrcp.f32 %v665_v36  ;;  %v688_v44 = vmul.f32 %v680_v37, %v579_v39  ;;  %v839_v36 = vadd.s32 32, %v835_v9  ;;  %v842_v39 = vadd.s32 56, %v835_v9 }
 0x22a   : > { %v1186_v38 = vpop.eup %1185 }
 0x22b   : > { %v681_v42 = vmul.f32 %v1186_v38, %v1384_v3  ;;  %v851_v38 = vadd.s32 %v844_v12, %v841_v33 }
 0x22c   : > { %v667_v43 = vpop.xlane.xlu1 %666 }
 0x22d   : > { %1193 = vrcp.f32 %v667_v43  ;;  %v689_v45 = vmul.f32 %v681_v42, %v580_v41  ;;  %v849_v43 = vadd.s32 %v844_v12, %v839_v36  ;;  %vm859_vm4 = vcmp.lt.s32.totalorder %v851_v38, 200 }
 0x22e   : > { %v1188_v46 = vpop.eup %1187 }
 0x22f   : > { %v696_v47 = vpack.c.bf16 %v689_v45, %v688_v44  ;;  %v682_v49 = vmul.f32 %v1188_v46, %v1387_v7  ;;  %v840_v44 = vadd.s32 40, %v835_v9  ;;  %vm857_vm5 = vcmp.lt.s32.totalorder %v849_v43, 200 }
 0x230   : > { %v669_v48 = vpop.xlane.xlu0 %668 }
 0x231   : > { %1195 = vrcp.f32 %v669_v48  ;;  %1118 = vmatprep.mubr.bf16.mxu1 %v696_v47  ;;  %v690_v53 = vmul.f32 %v682_v49, %v581_v51  ;;  %v852_v47 = vadd.s32 %v844_v12, %v842_v39 }
 0x232   : > { %v1190_v50 = vpop.eup %1189 }
 0x233   : > { %v683_v10 = vmul.f32 %v1190_v50, %v1393_v13  ;;  %v847_v13 = vadd.s32 %v844_v12, %v837_v11  ;;  %vm860_vm6 = vcmp.lt.s32.totalorder %v852_v47, 200 }
 0x234   : > { %v671_v52 = vpop.xlane.xlu1 %670 }
 0x235   : > { %1197 = vrcp.f32 %v671_v52  ;;  %v691_v54 = vmul.f32 %v683_v10, %v582_v4  ;;  %vm855_vm0 = vcmp.lt.s32.totalorder %v847_v13, 200  ;;  %v850_v4 = vadd.s32 %v844_v12, %v840_v44 }
 0x236   : > { %v1192_v55 = vpop.eup %1191 }
 0x237   : > { %v697_v56 = vpack.c.bf16 %v691_v54, %v690_v53  ;;  %v684_v57 = vmul.f32 %v1192_v55, %v1399_v17  ;;  %v836_v17 = vadd.s32 8, %v835_v9  ;;  %vm858_vm7 = vcmp.lt.s32.totalorder %v850_v4, 200 }
 0x239   : > { %1119 = vmatmul.mubr.bf16.vlgmr.msra.gmra.mxu1 %v697_v56  ;;  %v692_v61 = vmul.f32 %v684_v57, %v583_v59  ;;  %v846_v23 = vadd.s32 %v844_v12, %v836_v17 }
 0x23a   : > { %v1194_v58 = vpop.eup %1193 }
 0x23b   : > { %v685_v16 = vmul.f32 %v1194_v58, %v1405_v19  ;;  %v848_v19 = vadd.s32 %v844_v12, %v838_v14  ;;  %vm854_vm3 = vcmp.lt.s32.totalorder %v846_v23, 200 }
 0x23d   : > { %v693_v22 = vmul.f32 %v685_v16, %v584_v60  ;;  %vm856_vm2 = vcmp.lt.s32.totalorder %v848_v19, 200 }
 0x23e   : > { %v1196_v62 = vpop.eup %1195 }
 0x23f   : > { %v698_v63 = vpack.c.bf16 %v693_v22, %v692_v61  ;;  %v686_v1 = vmul.f32 %v1196_v62, %v1411_v21 }
 0x241   : > { %1122 = vmatprep.mubr.bf16.mxu1 %v698_v63  ;;  %v694_v28 = vmul.f32 %v686_v1, %v585_v2 }
 0x242   : > { %v1198_v3 = vpop.eup %1197 }
 0x243   : > { %v687_v6 = vmul.f32 %v1198_v3, %v1417_v24 }
 0x245   : > { %v695_v7 = vmul.f32 %v687_v6, %v586_v5 }
 0x247   : > { %v699_v34 = vpack.c.bf16 %v695_v7, %v694_v28 }
 0x249   : > { %1123 = vmatmul.mubr.bf16.gmra.mxu1 %v699_v34 }
 0x2f9   : > { %v1120_v18 = vpop.f32.mrf.mxu1 }
 0x2fa   : > { %v812_v20 = vadd.f32 %v1120_v18, %v1078_v15 }
 0x2fb   : > { %v803_v21 = vpop.f32.mrf.mxu1 }
 0x2fc   : > { %v879_v24 = vsel %vm855_vm0, %v812_v20, 0.0  ;;  %v804_v25 = vadd.f32 %v1078_v15, %v803_v21 }
 0x2fd   : > { %887 = vst [vmem:[%s1455_s16 + $0x10] sm:$0xff] %v879_v24  ;;  %v1121_v26 = vpop.f32.mrf.mxu1  ;;  %v908_v49 = vmul.f32 %v879_v24, %v879_v24 }
 0x2fe   : > { %v877_v27 = vsel %vm853_vm1, %v804_v25, 0.0  ;;  %v815_v29 = vadd.f32 %v1121_v26, %v1078_v15 }
 0x2ff   : > { %885 = vst [vmem:[%s1455_s16] sm:$0xff] %v877_v27  ;;  %v806_v30 = vpop.f32.mrf.mxu1  ;;  %v906_v41 = vmul.f32 %v877_v27, %v877_v27 }
 0x300   : > { %v880_v31 = vsel %vm856_vm2, %v815_v29, 0.0  ;;  %v807_v32 = vadd.f32 %v1078_v15, %v806_v30 }
 0x301   : > { %888 = vst [vmem:[%s1455_s16 + $0x18] sm:$0xff] %v880_v31  ;;  %v909_v57 = vmul.f32 %v880_v31, %v880_v31 }
 0x302   : > { %v878_v35 = vsel %vm854_vm3, %v807_v32, 0.0 }
 0x303   : > { %886 = vst [vmem:[%s1455_s16 + $0x8] sm:$0xff] %v878_v35  ;;  %v907_v37 = vmul.f32 %v878_v35, %v878_v35  ;;  %v893_v42 = vadd.f32 %v878_v35, %v877_v27 }
 0x305   : > { %v914_v45 = vadd.f32 %v907_v37, %v906_v41  ;;  %v894_v50 = vadd.f32 %v893_v42, %v879_v24 }
 0x307   : > { %v915_v53 = vadd.f32 %v914_v45, %v908_v49  ;;  %v895_v58 = vadd.f32 %v894_v50, %v880_v31 }
 0x309   : > { %v1124_v46 = vpop.f32.mrf.mxu1  ;;  %v916_v62 = vadd.f32 %v915_v53, %v909_v57 }
 0x30a   : > { %v828_v48 = vadd.f32 %v1124_v46, %v1078_v15 }
 0x30b   : > { %v819_v51 = vpop.f32.mrf.mxu1 }
 0x30c   : > { %v883_v10 = vsel %vm859_vm4, %v828_v48, 0.0  ;;  %v820_v52 = vadd.f32 %v1078_v15, %v819_v51 }
 0x30d   : > { %891 = vst [vmem:[%s1455_s16 + $0x30] sm:$0xff] %v883_v10  ;;  %v1125_v54 = vpop.f32.mrf.mxu1  ;;  %v912_v2 = vmul.f32 %v883_v10, %v883_v10 }
 0x30e   : > { %v881_v55 = vsel %vm857_vm5, %v820_v52, 0.0  ;;  %v831_v56 = vadd.f32 %v1125_v54, %v1078_v15 }
 0x30f   : > { %889 = vst [vmem:[%s1455_s16 + $0x20] sm:$0xff] %v881_v55  ;;  %v910_v59 = vmul.f32 %v881_v55, %v881_v55  ;;  %v822_v60 = vpop.f32.mrf.mxu1  ;;  %v896_v22 = vadd.f32 %v895_v58, %v881_v55 }
 0x310   : > { %v884_v16 = vsel %vm860_vm6, %v831_v56, 0.0  ;;  %v823_v61 = vadd.f32 %v1078_v15, %v822_v60 }
 0x311   : > { %892 = vst [vmem:[%s1455_s16 + $0x38] sm:$0xff] %v884_v16  ;;  %v917_v0 = vadd.f32 %v916_v62, %v910_v59  ;;  %v913_v28 = vmul.f32 %v884_v16, %v884_v16 }
 0x312   : > { %v882_v63 = vsel %vm858_vm7, %v823_v61, 0.0 }
 0x313   : > { %890 = vst [vmem:[%s1455_s16 + $0x28] sm:$0xff] %v882_v63  ;;  %v897_v1 = vadd.f32 %v896_v22, %v882_v63  ;;  %v911_v3 = vmul.f32 %v882_v63, %v882_v63 }
 0x315   : > { %v898_v5 = vadd.f32 %v897_v1, %v883_v10  ;;  %v918_v6 = vadd.f32 %v917_v0, %v911_v3 }
 0x317   : > { %v899_v7 = vadd.f32 %v898_v5, %v884_v16  ;;  %v919_v34 = vadd.f32 %v918_v6, %v912_v2 }
 0x319   : > { %v900_v8 = vrot.slane %v899_v7, 4  ;;  %v920_v9 = vadd.f32 %v919_v34, %v913_v28 }
 0x31b   : > { %v901_v11 = vadd.f32 %v900_v8, %v899_v7  ;;  %v921_v12 = vrot.slane %v920_v9, 4 }
 0x31d   : > { %v902_v13 = vrot.slane %v901_v11, 2  ;;  %v922_v14 = vadd.f32 %v921_v12, %v920_v9 }
 0x31f   : > { %v903_v15 = vadd.f32 %v902_v13, %v901_v11  ;;  %v923_v40 = vrot.slane %v922_v14, 2 }
 0x321   : > { %v904_v17 = vrot.slane %v903_v15, 1  ;;  %v924_v18 = vadd.f32 %v923_v40, %v922_v14 }
 0x323   : > { %v925_v19 = vrot.slane %v924_v18, 1  ;;  %v905_v20 = vadd.f32 %v904_v17, %v903_v15 }
 0x325   : > { %v926_v21 = vadd.f32 %v925_v19, %v924_v18 }
 0x327   : > { %v928_v23 = vsel %vm927_vm8, %v905_v20, %v926_v21 }
 0x328   : > { %v930_v24 = vsel %vm929_vm9, %v928_v23, 0.0 }
 0x329   : > { %931 = vst [vmem:[%s336_s20] sm:$0xff] %v930_v24 }
 0x32a PF: > { %s18_s24 = sadd.s32 1, %s1205_s24  }
 0x32b   : > { %p15_p5 = scmp.ge.s32.totalorder %s18_s24, 6  }
 0x32d   :  { %17 = sbr.rel (!%p15_p5) target bundleno = 1 (0x1), region = 92 }

</bundles_post_ra>
